<compile_context>
chip_gen: v7x
topology: tpu7x:2x2x1
jax: 0.10.0
libtpu: 0.0.40
codegen_flags: <defaults>
</compile_context>

<pallas_src>
import functools

import jax
import jax.numpy as jnp
from jax.experimental import pallas as pl
from jax.experimental.pallas import tpu as pltpu

IGNORE_INDEX = -1
ALPHA = 1.0  # NOTE: alpha is stored by the torch module but never used in forward.


def _span_loss_kernel(sl_ref, el_ref, meta_ref, out_ref, *, n_rows):
    """One grid step over tile_rows rows.

    Writes a (1, 8, 4) partial tile whose lanes are
    [start_loss_sum, start_count, end_loss_sum, end_count] (broadcast over sublanes).
    """
    tile_rows = sl_ref.shape[0]
    base = pl.program_id(0) * tile_rows

    meta = meta_ref[...]                              # (TR, 3) int32
    start_labels = meta[:, 0:1]                       # (TR, 1)
    end_labels = meta[:, 1:2]                         # (TR, 1)
    mask = meta[:, 2:3]                               # (TR, 1)

    col = jax.lax.broadcasted_iota(jnp.int32, (tile_rows, sl_ref.shape[1]), 1)
    row = base + jax.lax.broadcasted_iota(jnp.int32, (tile_rows, 1), 0)
    in_bounds = row < n_rows                          # static-N ragged-tile mask

    def masked_nll_partials(logits_raw, labels):
        logits = logits_raw.astype(jnp.float32)       # (TR, C) upcast per-tile
        # numerically stable log-softmax NLL at `labels`, sharing the `shifted`
        # intermediate between the lse and the label pick (one fewer tile pass).
        mx = jnp.max(logits, axis=-1, keepdims=True)
        shifted = logits - mx
        lse_shifted = jnp.log(jnp.sum(jnp.exp(shifted), axis=-1, keepdims=True))
        # pick shifted[label] via compare+select (no one-hot cast / extra multiply)
        # TODO(synk): out-of-range labels (>= C, != -1) silently yield picked=0 instead
        # of raising like torch's gather would.
        picked_shifted = jnp.sum(jnp.where(col == labels, shifted, 0.0),
                                 axis=-1, keepdims=True)             # (TR, 1)
        nll = lse_shifted - picked_shifted                           # (TR, 1)
        valid = jnp.logical_and(
            jnp.logical_and(mask == 1, labels != IGNORE_INDEX), in_bounds)
        # where (not multiply): garbage/inf/NaN in masked or out-of-bounds rows
        # must not poison the sum.
        loss_sum = jnp.sum(jnp.where(valid, nll, 0.0), keepdims=True)  # (1, 1)
        cnt = jnp.sum(valid.astype(jnp.float32), keepdims=True)       # (1, 1)
        return loss_sum, cnt

    s_sum, s_cnt = masked_nll_partials(sl_ref[...], start_labels)
    e_sum, e_cnt = masked_nll_partials(el_ref[...], end_labels)

    vals = jnp.concatenate([s_sum, s_cnt, e_sum, e_cnt], axis=1)      # (1, 4)
    out_ref[...] = jnp.broadcast_to(vals[None], (1, 8, 4))            # (1, 8, 4)


def _round_up(x, m):
    return (x + m - 1) // m * m


def _vmem_config():
    """(logits tile budget bytes, vmem_limit_bytes) -- generation-aware."""
    try:
        vmem_cap = int(pltpu.get_tpu_info().vmem_capacity_bytes)
    except Exception:  # query unavailable -> stay conservative
        vmem_cap = 0
    if vmem_cap >= 96 * 1024 * 1024:
        # v5e / v6e: 128 MiB physical VMEM -> big tiles, generous scoped limit.
        return 16 * 1024 * 1024, 64 * 1024 * 1024
    # v7x (64 MiB physical / 32 MiB default scoped) or unknown -> conservative.
    return 6 * 1024 * 1024, 32 * 1024 * 1024


def _pick_tile_rows(n_rows, n_classes, itemsize, budget_bytes):
    # Per-row VMEM footprint:
    #   * double-buffered logits (2 arrays x 2 buffers) in their INPUT dtype,
    #   * ~4 live f32 TRxC intermediates inside the kernel (casts / shifted / exp),
    #   * lane-padded (TR,3)->(TR,128) int32 meta block, double-buffered.
    per_row = 2 * 2 * n_classes * itemsize + 4 * n_classes * 4 + 2 * 128 * 4
    cap = budget_bytes // per_row
    cap = max(8, (cap // 8) * 8)
    cap = min(cap, 4096)
    # Give the grid >= ~4 steps (v7x: both TensorCores get work, plus pipeline depth),
    # but never shrink tiles below 512 rows (HBM-DMA efficiency cliff on v5e/v6e).
    steps_cap = _round_up(pl.cdiv(n_rows, 4), 8)
    if steps_cap >= 512:
        cap = min(cap, steps_cap)
    # Don't over-tile tiny inputs.
    return min(cap, _round_up(n_rows, 8))


@functools.partial(jax.jit, static_argnames=("tile_rows",))
def span_loss(start_logits, end_logits, start_positions, end_positions, masks,
              tile_rows=None):
    """start/end logits: (B, S, C); positions/masks: (B, S). Returns scalar loss."""
    B, S, C = start_logits.shape
    N = B * S
    budget, vmem_limit = _vmem_config()
    if tile_rows is None:
        tile_rows = _pick_tile_rows(
            N, C, jnp.dtype(start_logits.dtype).itemsize, budget)
    G = pl.cdiv(N, tile_rows)   # no padding of the logits; ragged tile masked in-kernel

    # Keep logits in their input dtype (bf16 stays bf16); kernel upcasts per-tile.
    sl = start_logits.reshape(N, C)
    el = end_logits.reshape(N, C)
    # Pack labels + mask into one int32 array -> one small DMA per step.
    meta = jnp.stack(
        [start_positions.reshape(N).astype(jnp.int32),
         end_positions.reshape(N).astype(jnp.int32),
         masks.reshape(N).astype(jnp.int32)],
        axis=1)                                                      # (N, 3)

    partials = pl.pallas_call(
        functools.partial(_span_loss_kernel, n_rows=N),
        out_shape=jax.ShapeDtypeStruct((G, 8, 4), jnp.float32),
        grid_spec=pltpu.PrefetchScalarGridSpec(
            num_scalar_prefetch=0,
            grid=(G,),
            in_specs=[
                pl.BlockSpec((tile_rows, C), lambda i: (i, 0)),
                pl.BlockSpec((tile_rows, C), lambda i: (i, 0)),
                pl.BlockSpec((tile_rows, 3), lambda i: (i, 0)),
            ],
            out_specs=pl.BlockSpec((1, 8, 4), lambda i: (i, 0, 0)),
        ),
        compiler_params=pltpu.CompilerParams(
            # Each grid step owns its own output block -> row axis is embarrassingly
            # parallel; harmless on single-core v5e/v6e.
            # TODO(synk): on v7x verify in the Mosaic dump that this shards across the
            # 2 TensorCores; if not, switch to pltpu.CORE_PARALLEL for that axis.
            dimension_semantics=("parallel",),
            vmem_limit_bytes=vmem_limit),
    )(sl, el, meta)

    sums = jnp.sum(partials[:, 0, :], axis=0)      # (4,) = [s_sum, s_cnt, e_sum, e_cnt]
    start_loss = sums[0] / sums[1]
    end_loss = sums[2] / sums[3]
    # NOTE: if no valid rows exist for start (or end), the count is 0 and this is
    # NaN -- same as torch CrossEntropyLoss with no valid targets.
    return (start_loss + end_loss) * 0.5


def _reference_span_loss(start_logits, end_logits, start_positions,
                         end_positions, masks):
    B, S, C = start_logits.shape
    sl = start_logits.reshape(-1, C).astype(jnp.float32)
    el = end_logits.reshape(-1, C).astype(jnp.float32)
    sp = start_positions.reshape(-1)
    ep = end_positions.reshape(-1)
    m = masks.reshape(-1)

    def ce(logits, labels):
        lse = jax.scipy.special.logsumexp(logits, axis=-1)
        picked = jnp.take_along_axis(
            logits, jnp.clip(labels, 0)[:, None], axis=-1)[:, 0]
        nll = lse - picked
        valid = jnp.logical_and(m == 1, labels != IGNORE_INDEX)
        return jnp.sum(jnp.where(valid, nll, 0.0)) / jnp.sum(valid)

    return (ce(sl, sp) + ce(el, ep)) * 0.5


def _run_case(key, B, S, C, dtype=jnp.float32, tile_rows=None, atol=1e-5):
    k1, k2, k3, k4, k5 = jax.random.split(key, 5)
    start_logits = jax.random.normal(k1, (B, S, C), dtype=dtype)
    end_logits = jax.random.normal(k2, (B, S, C), dtype=dtype)
    start_positions = jax.random.randint(k3, (B, S), 0, C, dtype=jnp.int32)
    end_positions = jax.random.randint(k4, (B, S), 0, C, dtype=jnp.int32)
    # sprinkle a few ignore_index labels
    start_positions = start_positions.at[0, 1].set(IGNORE_INDEX)
    end_positions = end_positions.at[B - 1, S // 2].set(IGNORE_INDEX)
    masks = jax.random.bernoulli(k5, 0.75, (B, S)).astype(jnp.int32)
    # make sure at least one active position exists
    masks = masks.at[0, 0].set(1)

    loss = span_loss(start_logits, end_logits, start_positions,
                     end_positions, masks, tile_rows=tile_rows)
    loss = jax.block_until_ready(loss)
    ref = _reference_span_loss(start_logits, end_logits, start_positions,
                               end_positions, masks)
    assert jnp.allclose(loss, ref, atol=atol, rtol=1e-4), (loss, ref)


if __name__ == "__main__":
    key = jax.random.PRNGKey(0)
    ka, kb, kc = jax.random.split(key, 3)
    # case 1: rows divisible by 8, f32 logits
    _run_case(ka, B=2, S=8, C=128)
    # case 2: rows NOT divisible by 8 -> exercises in-kernel ragged-row masking (G=1)
    _run_case(kb, B=2, S=7, C=128)
    # case 3: bf16 logits, explicit small tile -> multi-step grid with ragged last tile
    _run_case(kc, B=4, S=37, C=128, dtype=jnp.bfloat16, tile_rows=32, atol=1e-4)
    print("KERNEL_OK")
</pallas_src>

<mosaic_0001>
module attributes {stable_mosaic.version = 11 : i64} {
  func.func @_span_loss_kernel(%arg0: i32, %arg1: memref<16x128xf32, #tpu.memory_space<vmem>>, %arg2: memref<16x128xf32, #tpu.memory_space<vmem>>, %arg3: memref<16x3xi32, #tpu.memory_space<vmem>>, %arg4: memref<1x8x4xf32, #tpu.memory_space<vmem>>) attributes {dimension_semantics = [#tpu.dimension_semantics<parallel>], iteration_bounds = array<i64: 1>, scalar_prefetch = 0 : i64, scratch_operands = 0 : i64, tpu.core_type = #tpu.core_type<tc>, window_params = [{transform_indices = @transform_0, window_bounds = array<i64: 16, 128>}, {transform_indices = @transform_1, window_bounds = array<i64: 16, 128>}, {transform_indices = @transform_2, window_bounds = array<i64: 16, 3>}, {transform_indices = @transform_3, window_bounds = array<i64: 1, 8, 4>}]} {
    %c16_i32 = arith.constant 16 : i32
    %0 = arith.muli %arg0, %c16_i32 : i32
    %c0 = arith.constant 0 : index
    %c0_0 = arith.constant 0 : index
    %1 = vector.load %arg3[%c0, %c0_0] : memref<16x3xi32, #tpu.memory_space<vmem>>, vector<16x3xi32>
    %2 = vector.extract_strided_slice %1 {offsets = [0, 0], sizes = [16, 1], strides = [1, 1]} : vector<16x3xi32> to vector<16x1xi32>
    %3 = vector.extract_strided_slice %1 {offsets = [0, 1], sizes = [16, 1], strides = [1, 1]} : vector<16x3xi32> to vector<16x1xi32>
    %4 = vector.extract_strided_slice %1 {offsets = [0, 2], sizes = [16, 1], strides = [1, 1]} : vector<16x3xi32> to vector<16x1xi32>
    %5 = tpu.iota {dimensions = array<i32: 1>} : vector<16x128xi32>
    %6 = tpu.iota {dimensions = array<i32: 0>} : vector<16x1xi32>
    %7 = vector.broadcast %0 : i32 to vector<16x1xi32>
    %8 = arith.addi %7, %6 : vector<16x1xi32>
    %c16_i32_1 = arith.constant 16 : i32
    %9 = vector.broadcast %c16_i32_1 : i32 to vector<16x1xi32>
    %10 = arith.cmpi slt, %8, %9 : vector<16x1xi32>
    %c0_2 = arith.constant 0 : index
    %c0_3 = arith.constant 0 : index
    %11 = vector.load %arg1[%c0_2, %c0_3] : memref<16x128xf32, #tpu.memory_space<vmem>>, vector<16x128xf32>
    %cst = arith.constant dense<0xFF800000> : vector<16xf32>
    %12 = vector.multi_reduction <maximumf>, %11, %cst [1] : vector<16x128xf32> to vector<16xf32>
    %13 = vector.shape_cast %12 : vector<16xf32> to vector<16x1xf32>
    %14 = vector.broadcast %13 : vector<16x1xf32> to vector<16x128xf32>
    %15 = arith.subf %11, %14 : vector<16x128xf32>
    %16 = math.exp %15 : vector<16x128xf32>
    %cst_4 = arith.constant dense<0.000000e+00> : vector<16xf32>
    %17 = vector.multi_reduction <add>, %16, %cst_4 [1] : vector<16x128xf32> to vector<16xf32>
    %18 = vector.shape_cast %17 : vector<16xf32> to vector<16x1xf32>
    %19 = math.log %18 : vector<16x1xf32>
    %20 = vector.broadcast %2 : vector<16x1xi32> to vector<16x128xi32>
    %21 = arith.cmpi eq, %5, %20 : vector<16x128xi32>
    %cst_5 = arith.constant 0.000000e+00 : f32
    %22 = vector.broadcast %cst_5 : f32 to vector<16x128xf32>
    %23 = arith.select %21, %15, %22 : vector<16x128xi1>, vector<16x128xf32>
    %cst_6 = arith.constant dense<0.000000e+00> : vector<16xf32>
    %24 = vector.multi_reduction <add>, %23, %cst_6 [1] : vector<16x128xf32> to vector<16xf32>
    %25 = vector.shape_cast %24 : vector<16xf32> to vector<16x1xf32>
    %26 = arith.subf %19, %25 : vector<16x1xf32>
    %c1_i32 = arith.constant 1 : i32
    %27 = vector.broadcast %c1_i32 : i32 to vector<16x1xi32>
    %28 = arith.cmpi eq, %4, %27 : vector<16x1xi32>
    %c-1_i32 = arith.constant -1 : i32
    %29 = vector.broadcast %c-1_i32 : i32 to vector<16x1xi32>
    %30 = arith.cmpi ne, %2, %29 : vector<16x1xi32>
    %31 = arith.andi %28, %30 : vector<16x1xi1>
    %32 = arith.andi %31, %10 : vector<16x1xi1>
    %cst_7 = arith.constant 0.000000e+00 : f32
    %33 = vector.broadcast %cst_7 : f32 to vector<16x1xf32>
    %34 = arith.select %32, %26, %33 : vector<16x1xi1>, vector<16x1xf32>
    %35 = vector.shape_cast %34 : vector<16x1xf32> to vector<1x16x1xf32>
    %cst_8 = arith.constant dense<0.000000e+00> : vector<1xf32>
    %36 = vector.multi_reduction <add>, %35, %cst_8 [1, 2] : vector<1x16x1xf32> to vector<1xf32>
    %37 = vector.shape_cast %36 : vector<1xf32> to vector<1x1x1xf32>
    %38 = vector.extract %37[0, 0, 0] : f32 from vector<1x1x1xf32>
    %39 = vector.broadcast %38 : f32 to vector<1x1xf32>
    %40 = arith.extui %32 : vector<16x1xi1> to vector<16x1xi32>
    %41 = arith.sitofp %40 : vector<16x1xi32> to vector<16x1xf32>
    %42 = vector.shape_cast %41 : vector<16x1xf32> to vector<1x16x1xf32>
    %cst_9 = arith.constant dense<0.000000e+00> : vector<1xf32>
    %43 = vector.multi_reduction <add>, %42, %cst_9 [1, 2] : vector<1x16x1xf32> to vector<1xf32>
    %44 = vector.shape_cast %43 : vector<1xf32> to vector<1x1x1xf32>
    %45 = vector.extract %44[0, 0, 0] : f32 from vector<1x1x1xf32>
    %46 = vector.broadcast %45 : f32 to vector<1x1xf32>
    %c0_10 = arith.constant 0 : index
    %c0_11 = arith.constant 0 : index
    %47 = vector.load %arg2[%c0_10, %c0_11] : memref<16x128xf32, #tpu.memory_space<vmem>>, vector<16x128xf32>
    %cst_12 = arith.constant dense<0xFF800000> : vector<16xf32>
    %48 = vector.multi_reduction <maximumf>, %47, %cst_12 [1] : vector<16x128xf32> to vector<16xf32>
    %49 = vector.shape_cast %48 : vector<16xf32> to vector<16x1xf32>
    %50 = vector.broadcast %49 : vector<16x1xf32> to vector<16x128xf32>
    %51 = arith.subf %47, %50 : vector<16x128xf32>
    %52 = math.exp %51 : vector<16x128xf32>
    %cst_13 = arith.constant dense<0.000000e+00> : vector<16xf32>
    %53 = vector.multi_reduction <add>, %52, %cst_13 [1] : vector<16x128xf32> to vector<16xf32>
    %54 = vector.shape_cast %53 : vector<16xf32> to vector<16x1xf32>
    %55 = math.log %54 : vector<16x1xf32>
    %56 = vector.broadcast %3 : vector<16x1xi32> to vector<16x128xi32>
    %57 = arith.cmpi eq, %5, %56 : vector<16x128xi32>
    %cst_14 = arith.constant 0.000000e+00 : f32
    %58 = vector.broadcast %cst_14 : f32 to vector<16x128xf32>
    %59 = arith.select %57, %51, %58 : vector<16x128xi1>, vector<16x128xf32>
    %cst_15 = arith.constant dense<0.000000e+00> : vector<16xf32>
    %60 = vector.multi_reduction <add>, %59, %cst_15 [1] : vector<16x128xf32> to vector<16xf32>
    %61 = vector.shape_cast %60 : vector<16xf32> to vector<16x1xf32>
    %62 = arith.subf %55, %61 : vector<16x1xf32>
    %c1_i32_16 = arith.constant 1 : i32
    %63 = vector.broadcast %c1_i32_16 : i32 to vector<16x1xi32>
    %64 = arith.cmpi eq, %4, %63 : vector<16x1xi32>
    %c-1_i32_17 = arith.constant -1 : i32
    %65 = vector.broadcast %c-1_i32_17 : i32 to vector<16x1xi32>
    %66 = arith.cmpi ne, %3, %65 : vector<16x1xi32>
    %67 = arith.andi %64, %66 : vector<16x1xi1>
    %68 = arith.andi %67, %10 : vector<16x1xi1>
    %cst_18 = arith.constant 0.000000e+00 : f32
    %69 = vector.broadcast %cst_18 : f32 to vector<16x1xf32>
    %70 = arith.select %68, %62, %69 : vector<16x1xi1>, vector<16x1xf32>
    %71 = vector.shape_cast %70 : vector<16x1xf32> to vector<1x16x1xf32>
    %cst_19 = arith.constant dense<0.000000e+00> : vector<1xf32>
    %72 = vector.multi_reduction <add>, %71, %cst_19 [1, 2] : vector<1x16x1xf32> to vector<1xf32>
    %73 = vector.shape_cast %72 : vector<1xf32> to vector<1x1x1xf32>
    %74 = vector.extract %73[0, 0, 0] : f32 from vector<1x1x1xf32>
    %75 = vector.broadcast %74 : f32 to vector<1x1xf32>
    %76 = arith.extui %68 : vector<16x1xi1> to vector<16x1xi32>
    %77 = arith.sitofp %76 : vector<16x1xi32> to vector<16x1xf32>
    %78 = vector.shape_cast %77 : vector<16x1xf32> to vector<1x16x1xf32>
    %cst_20 = arith.constant dense<0.000000e+00> : vector<1xf32>
    %79 = vector.multi_reduction <add>, %78, %cst_20 [1, 2] : vector<1x16x1xf32> to vector<1xf32>
    %80 = vector.shape_cast %79 : vector<1xf32> to vector<1x1x1xf32>
    %81 = vector.extract %80[0, 0, 0] : f32 from vector<1x1x1xf32>
    %82 = vector.broadcast %81 : f32 to vector<1x1xf32>
    %83 = tpu.concatenate %39, %46, %75, %82 in 1 : vector<1x1xf32>, vector<1x1xf32>, vector<1x1xf32>, vector<1x1xf32> -> vector<1x4xf32>
    %84 = vector.shape_cast %83 : vector<1x4xf32> to vector<1x1x4xf32>
    %85 = vector.shape_cast %84 : vector<1x1x4xf32> to vector<1x1x4xf32>
    %86 = vector.broadcast %85 : vector<1x1x4xf32> to vector<1x8x4xf32>
    %c0_21 = arith.constant 0 : index
    %c0_22 = arith.constant 0 : index
    %c0_23 = arith.constant 0 : index
    %87 = vector.load %arg4[%c0_21, %c0_22, %c0_23] : memref<1x8x4xf32, #tpu.memory_space<vmem>>, vector<1x8x4xf32>
    tpu.vector_store %arg4[%c0_21, %c0_22, %c0_23], %86 {strides = array<i32>} : memref<1x8x4xf32, #tpu.memory_space<vmem>>, vector<1x8x4xf32>,
    return
  }
  func.func @transform_0(%arg0: i32) -> (i32, i32) {
    %c0_i32 = arith.constant 0 : i32
    %c0_i32_0 = arith.constant 0 : i32
    return %arg0, %c0_i32 : i32, i32
  }
  func.func @transform_1(%arg0: i32) -> (i32, i32) {
    %c0_i32 = arith.constant 0 : i32
    %c0_i32_0 = arith.constant 0 : i32
    return %arg0, %c0_i32 : i32, i32
  }
  func.func @transform_2(%arg0: i32) -> (i32, i32) {
    %c0_i32 = arith.constant 0 : i32
    %c0_i32_0 = arith.constant 0 : i32
    return %arg0, %c0_i32 : i32, i32
  }
  func.func @transform_3(%arg0: i32) -> (i32, i32, i32) {
    %c0_i32 = arith.constant 0 : i32
    %c0_i32_0 = arith.constant 0 : i32
    %c0_i32_1 = arith.constant 0 : i32
    return %arg0, %c0_i32, %c0_i32_0 : i32, i32, i32
  }
}

</mosaic_0001>

<bundles_post_ra>
// kernel: span_loss.1
= control target key start
LH: loop header
LB: loop body
LE: loop exit
PB: predicated region body
PF: predicated region fallthrough
CT: control target
= control target key end

     0   :  { %v285_v2 = vmov 0   ;;  %v286_v7 = vmov 1   ;;  %v17_v16 = vlaneseq  ;;  %v289_v40 = vmov 0.0   ;;  %s389_s1 = inlined_call_operand.vmem [shape: f32[16,128], index: 1, kind: input, shape index: {}]   ;;  %s390_s0 = inlined_call_operand.vmem [shape: f32[16,128], index: 0, kind: input, shape index: {}]   ;;  %s391_s2 = inlined_call_operand.vmem [shape: s32[16,3], index: 2, kind: input, shape index: {}]   ;;  %s392_s3 = inlined_call_operand.vmem [shape: f32[1,8,4], index: 3, kind: output, shape index: {}]  }
   0x1   :  { %v128_v0 = vld [vmem:[%s389_s1] sm:$0xff]  ;;  %256 = vset.pattern.permute.xlu1 %v285_v2  ;;  %255 = vset.pattern.permute.xlu0 %v285_v2  ;;  %v129_v3 = vld [vmem:[%s389_s1 + $0x8] sm:$0xff]  ;;  %s288_s1 = smov 1  }
   0x2   :  { %v27_v1 = vld [vmem:[%s390_s0] sm:$0xff]  ;;  %130 = vmax.xlane.f32.xlu1 %v128_v0  ;;  %v28_v4 = vld [vmem:[%s390_s0 + $0x8] sm:$0xff]  ;;  %s287_s0 = smov 2   ;;  %v18_v19 = vand.u32 127, %v17_v16 }
   0x3   :  { %29 = vmax.xlane.f32.xlu0 %v27_v1  ;;  %v326_v5 = vld [vmem:[%s391_s2 + $0x8] sm:$0xff]  ;;  %v332_v6 = vld [vmem:[%s391_s2] sm:$0xff]  ;;  %s290_s2 = smov 126  }
   0x4   :  { %vm65_vm0 = vcmp.ne.s32.totalorder %v332_v6, 4294967295  ;;  %vm66_vm1 = vcmp.ne.s32.totalorder %v326_v5, 4294967295  ;;  %vm63_vm6 = vcmp.eq.s32.totalorder %v332_v6, 1  ;;  %vm64_vm8 = vcmp.eq.s32.totalorder %v326_v5, 1 }
   0x5   :  { %v337_v8 = vsel %vm65_vm0, 1, %v285_v2  ;;  %v68_v9 = vsel %vm66_vm1, 1, %v285_v2  ;;  %vm89_vm0 = vcmask 7168   ;;  %vm223_vm1 = vcmask 15360  }
   0x6   :  { %132 = vmax.xlane.f32.xlu1 %v129_v3 }
   0x7   :  { %31 = vmax.xlane.f32.xlu0 %v28_v4 }
  0x17   :  { %51 = vperm.xlu1 %256, %v326_v5  }
  0x1b   :  { %257 = vset.pattern.permute.xlu1 %v286_v7 }
  0x1c   :  { %149 = vperm.xlu1 %257, %v332_v6  }
  0x1d   :  { %48 = vperm.xlu0 %255, %v332_v6  }
  0x20   :  { %152 = vperm.xlu1 %257, %v326_v5  }
  0x21   :  { %69 = vrot.lane.b32.xlu0 %v337_v8, %s287_s0 }
  0x22   :  { %268 = vset.pattern.permute.xlu0 %v286_v7 }
  0x24   :  { %71 = vrot.lane.b32.xlu1 %v68_v9, %s287_s0 }
  0x8f   :  { %v131_v10 = vpop.xlane.xlu1 %130 }
  0x90   :  { %v30_v11 = vpop.xlane.xlu0 %29  ;;  %v134_v20 = vsub.f32 %v128_v0, %v131_v10 }
  0x91   :  { %v33_v17 = vsub.f32 %v27_v1, %v30_v11 }
  0x92   :  { %v136_v26 = vmul.f32 1.442695, %v134_v20 }
  0x93   :  { %v133_v12 = vpop.xlane.xlu1 %132  ;;  %v35_v21 = vmul.f32 1.442695, %v33_v17 }
  0x94   :  { %v32_v13 = vpop.xlane.xlu0 %31  ;;  %v135_v27 = vsub.f32 %v129_v3, %v133_v12 }
  0x95   :  { %v34_v14 = vsub.f32 %v28_v4, %v32_v13 }
  0x96   :  { %v138_v31 = vmul.f32 1.442695, %v135_v27 }
  0x97   :  { %v37_v15 = vmul.f32 1.442695, %v34_v14  ;;  %v52_v18 = vpop.permute.xlu1 %51 }
  0x98   :  { %vm54_vm4 = vcmp.eq.s32.totalorder %v18_v19, %v52_v18 }
  0x99   :  { %269 = vpow2.f32 %v37_v15  ;;  %v56_v29 = vsel %vm54_vm4, %v34_v14, 0.0 }
  0x9a   :  { %271 = vpow2.f32 %v35_v21 }
  0x9b   :  { %v150_v22 = vpop.permute.xlu1 %149  ;;  %273 = vpow2.f32 %v136_v26 }
  0x9c   :  { %v49_v23 = vpop.permute.xlu0 %48  ;;  %vm154_vm2 = vcmp.eq.s32.totalorder %v18_v19, %v150_v22  ;;  %275 = vpow2.f32 %v138_v31 }
  0x9d   :  { %vm53_vm3 = vcmp.eq.s32.totalorder %v18_v19, %v49_v23  ;;  %v156_v24 = vsel %vm154_vm2, %v134_v20, 0.0  ;;  %vm225_vm2 = vcmask 23552  }
  0x9e   :  { %v55_v25 = vsel %vm53_vm3, %v33_v17, 0.0  ;;  %158 = vadd.xlane.f32.xlu0 %v156_v24  ;;  %vm231_vm3 = vcmask 31744  }
  0x9f   :  { %57 = vadd.xlane.f32.xlu1 %v55_v25  ;;  %v153_v28 = vpop.permute.xlu1 %152 }
  0xa0   :  { %vm155_vm5 = vcmp.eq.s32.totalorder %v18_v19, %v153_v28  ;;  %v70_v36 = vpop.permute.xlu0 %69 }
  0xa1   :  { %v157_v32 = vsel %vm155_vm5, %v135_v27, 0.0  ;;  %vm73_vm7 = vcmp.ne.s32.totalorder %v70_v36, 0 }
  0xa2   :  { %vm347_vm10 = vmand %vm63_vm6, %vm73_vm7 }
  0xa3   :  { %59 = vadd.xlane.f32.xlu1 %v56_v29  ;;  %v270_v30 = vpop.eup %269  ;;  %v72_v37 = vpop.permute.xlu1 %71  ;;  %v237_v42 = vsel %vm347_vm10, 1.0, %v289_v40 }
  0xa4   :  { %41 = vadd.xlane.f32.xlu0 %v270_v30  ;;  %v272_v33 = vpop.eup %271  ;;  %vm74_vm9 = vcmp.ne.s32.totalorder %v72_v37, 0 }
  0xa5   :  { %v274_v34 = vpop.eup %273  ;;  %vm353_vm11 = vmand %vm64_vm8, %vm74_vm9 }
  0xa6   :  { %v276_v35 = vpop.eup %275  ;;  %v238_v41 = vsel %vm353_vm11, 1.0, %v289_v40 }
  0xa7   :  { %160 = vadd.xlane.f32.xlu1 %v157_v32  ;;  %v258_v43 = vpack.i.bf16 %v238_v41, %v237_v42 }
  0xab   :  { %39 = vadd.xlane.f32.xlu1 %v272_v33 }
  0xaf   :  { %140 = vadd.xlane.f32.xlu1 %v274_v34 }
  0xb3   :  { %142 = vadd.xlane.f32.xlu1 %v276_v35 }
  0xba   :  { %166 = vrot.lane.b32.xlu0 %v68_v9, %s288_s1 }
  0xc4   :  { %164 = vrot.lane.b32.xlu1 %v337_v8, %s288_s1 }
  0xc8   :  { %259 = vrot.lane.b32.xlu1 %v258_v43, %s290_s2 }
 0x12b   :  { %v159_v45 = vpop.xlane.xlu0 %158 }
 0x12c   :  { %v58_v44 = vpop.xlane.xlu1 %57 }
 0x130   :  { %v60_v46 = vpop.xlane.xlu1 %59 }
 0x131   :  { %v42_v47 = vpop.xlane.xlu0 %41 }
 0x132   :  { %277 = vlog2.f32 %v42_v47 }
 0x134   :  { %v161_v48 = vpop.xlane.xlu1 %160 }
 0x135   :  { %v167_v56 = vpop.permute.xlu0 %166 }
 0x136   :  { %vm169_vm12 = vcmp.ne.s32.totalorder %v167_v56, 0 }
 0x137   :  { %vm171_vm14 = vmand %vm64_vm8, %vm169_vm12 }
 0x138   :  { %v40_v49 = vpop.xlane.xlu1 %39  ;;  %v240_v4 = vsel %vm171_vm14, 1.0, %v289_v40 }
 0x139   :  { %279 = vlog2.f32 %v40_v49 }
 0x13c   :  { %v141_v50 = vpop.xlane.xlu1 %140  ;;  %v278_v51 = vpop.eup %277 }
 0x13d   :  { %281 = vlog2.f32 %v141_v50  ;;  %v46_v52 = vmul.f32 0.6931472, %v278_v51 }
 0x13f   :  { %v62_v54 = vsub.f32 %v46_v52, %v60_v46 }
 0x140   :  { %v143_v53 = vpop.xlane.xlu1 %142 }
 0x141   :  { %283 = vlog2.f32 %v143_v53  ;;  %v80_v55 = vsel %vm353_vm11, %v62_v54, 0.0 }
 0x142   :  { %85 = vrot.lane.b32.xlu0 %v80_v55, %s290_s2 }
 0x143   :  { %v280_v57 = vpop.eup %279 }
 0x144   :  { %v44_v58 = vmul.f32 0.6931472, %v280_v57  ;;  %v165_v59 = vpop.permute.xlu1 %164 }
 0x145   :  { %vm168_vm13 = vcmp.ne.s32.totalorder %v165_v59, 0 }
 0x146   :  { %v61_v60 = vsub.f32 %v44_v58, %v58_v44  ;;  %vm170_vm15 = vmand %vm63_vm6, %vm168_vm13 }
 0x147   :  { %v282_v61 = vpop.eup %281  ;;  %v239_v3 = vsel %vm170_vm15, 1.0, %v289_v40 }
 0x148   :  { %v145_v62 = vmul.f32 0.6931472, %v282_v61  ;;  %v79_v63 = vsel %vm347_vm10, %v61_v60, 0.0  ;;  %v263_v9 = vpack.i.bf16 %v240_v4, %v239_v3  ;;  %v260_v5 = vpop.permute.xlu1 %259  ;;  %v228_v60 = vshrl.u32 %v17_v16, 7 }
 0x149   :  { %83 = vrot.lane.b32.xlu1 %v79_v63, %s290_s2  ;;  %v262_v6 = vunpack.i.h.bf16 %v260_v5  ;;  %v261_v11 = vunpack.i.l.bf16 %v260_v5 }
 0x14a   :  { %v162_v0 = vsub.f32 %v145_v62, %v159_v45 }
 0x14b   :  { %v284_v1 = vpop.eup %283  ;;  %v115_v12 = vsel %vm89_vm0, %v261_v11, 0.0  ;;  %v116_v13 = vsel %vm89_vm0, %v262_v6, 0.0 }
 0x14c   :  { %v147_v2 = vmul.f32 0.6931472, %v284_v1  ;;  %v174_v7 = vsel %vm170_vm15, %v162_v0, 0.0  ;;  %v117_v14 = vadd.f32 %v116_v13, %v115_v12  ;;  %v229_v1 = vsub.s32 0, %v228_v60 }
 0x14d   :  { %178 = vrot.lane.b32.xlu0 %v174_v7, %s290_s2 }
 0x14e   :  { %v163_v8 = vsub.f32 %v147_v2, %v161_v48 }
 0x150   :  { %v175_v10 = vsel %vm171_vm14, %v163_v8, 0.0 }
 0x151   :  { %264 = vrot.lane.b32.xlu0 %v263_v9, %s290_s2  ;;  %180 = vrot.lane.b32.xlu1 %v175_v10, %s290_s2 }
 0x170   :  { %118 = vadd.xlane.f32.xlu0 %v117_v14 }
 0x1b4   :  { %v86_v15 = vpop.permute.xlu0 %85 }
 0x1b5   :  { %v91_v18 = vsel %vm89_vm0, %v86_v15, 0.0 }
 0x1bb   :  { %v84_v17 = vpop.permute.xlu1 %83 }
 0x1bc   :  { %v90_v19 = vsel %vm89_vm0, %v84_v17, 0.0 }
 0x1bd   :  { %v92_v20 = vadd.f32 %v91_v18, %v90_v19 }
 0x1bf   :  { %93 = vadd.xlane.f32.xlu1 %v92_v20  ;;  %v179_v21 = vpop.permute.xlu0 %178 }
 0x1c0   :  { %v184_v24 = vsel %vm89_vm0, %v179_v21, 0.0 }
 0x1c3   :  { %v181_v22 = vpop.permute.xlu1 %180  ;;  %v265_v23 = vpop.permute.xlu0 %264 }
 0x1c4   :  { %v185_v25 = vsel %vm89_vm0, %v181_v22, 0.0  ;;  %v267_v26 = vunpack.i.h.bf16 %v265_v23  ;;  %v266_v27 = vunpack.i.l.bf16 %v265_v23 }
 0x1c5   :  { %v186_v28 = vadd.f32 %v185_v25, %v184_v24 }
 0x1c6   :  { %v209_v29 = vsel %vm89_vm0, %v266_v27, 0.0  ;;  %v210_v30 = vsel %vm89_vm0, %v267_v26, 0.0 }
 0x1c7   :  { %187 = vadd.xlane.f32.xlu0 %v186_v28  ;;  %v211_v31 = vadd.f32 %v210_v30, %v209_v29 }
 0x1c9   :  { %212 = vadd.xlane.f32.xlu1 %v211_v31 }
 0x1fd   :  { %v119_v32 = vpop.xlane.xlu0 %118 }
 0x1fe   :  { %v120_v33 = vrot.slane %v119_v32, 4 }
 0x200   :  { %v121_v34 = vadd.f32 %v120_v33, %v119_v32 }
 0x202   :  { %v122_v35 = vrot.slane %v121_v34, 2 }
 0x204   :  { %v123_v39 = vadd.f32 %v122_v35, %v121_v34 }
 0x206   :  { %v124_v43 = vrot.slane %v123_v39, 1 }
 0x208   :  { %v125_v50 = vadd.f32 %v124_v43, %v123_v39 }
 0x24c   :  { %v94_v36 = vpop.xlane.xlu1 %93 }
 0x24d   :  { %v95_v37 = vrot.slane %v94_v36, 4 }
 0x24f   :  { %v96_v38 = vadd.f32 %v95_v37, %v94_v36 }
 0x251   :  { %v97_v40 = vrot.slane %v96_v38, 2 }
 0x253   :  { %v98_v41 = vadd.f32 %v97_v40, %v96_v38 }
 0x254   :  { %v188_v42 = vpop.xlane.xlu0 %187 }
 0x255   :  { %v189_v44 = vrot.slane %v188_v42, 4  ;;  %v99_v45 = vrot.slane %v98_v41, 1 }
 0x256   :  { %v213_v46 = vpop.xlane.xlu1 %212 }
 0x257   :  { %v190_v47 = vadd.f32 %v189_v44, %v188_v42  ;;  %v214_v48 = vrot.slane %v213_v46, 4  ;;  %v100_v49 = vadd.f32 %v99_v45, %v98_v41 }
 0x259   :  { %v191_v51 = vrot.slane %v190_v47, 2  ;;  %v215_v52 = vadd.f32 %v214_v48, %v213_v46  ;;  %241 = vpush %v100_v49 }
 0x25a   :  { %243 = vpush %v125_v50 }
 0x25b   :  { %v192_v53 = vadd.f32 %v191_v51, %v190_v47  ;;  %v216_v54 = vrot.slane %v215_v52, 2 }
 0x25d   :  { %v217_v55 = vadd.f32 %v216_v54, %v215_v52  ;;  %v193_v56 = vrot.slane %v192_v53, 1 }
 0x25f   :  { %v194_v57 = vadd.f32 %v193_v56, %v192_v53  ;;  %v218_v58 = vrot.slane %v217_v55, 1 }
 0x261   :  { %245 = vpush %v194_v57  ;;  %v219_v59 = vadd.f32 %v218_v58, %v217_v55 }
 0x263   :  { %247 = vpush %v219_v59 }
 0x28a   :  { %s242_s24 = spop %241 }
 0x28b   :  { %s244_s25 = spop %243  ;;  %v102_v61 = vstv %s242_s24 }
 0x28c   :  { %v127_v62 = vstv %s244_s25 }
 0x28d   :  { %v222_v63 = vsel %vm89_vm0, %v102_v61, %v127_v62 }
 0x292   :  { %s246_s26 = spop %245 }
 0x293   :  { %v196_v0 = vstv %s246_s26 }
 0x294   :  { %v224_v2 = vsel %vm223_vm1, %v222_v63, %v196_v0  ;;  %s248_s27 = spop %247 }
 0x295   :  { %v221_v3 = vstv %s248_s27 }
 0x296   :  { %v226_v4 = vsel %vm225_vm2, %v224_v2, %v221_v3 }
 0x297   :  { %v230_v7 = vrot.slane %v226_v4, %v229_v1 }
 0x299   :  { %232 = vst.msk [vmem:[%s392_s3] sm:$0xff] %vm231_vm3, %v230_v7 }

</bundles_post_ra>
